<compile_context>
chip_gen: v6e
topology: v6e:2x2x1
jax: 0.10.0
libtpu: 0.0.40
codegen_flags: <defaults>
</compile_context>

<pallas_src>
import math

import jax
import jax.numpy as jnp
import numpy as np
from jax.experimental import pallas as pl
from jax.experimental.pallas import tpu as pltpu


_NEG_LARGE = -3.4e38  # finite stand-in for -inf in the masked channel max


def _vmem_plan():
    """Return (vmem_limit_bytes, max_tile_bytes).  128-MiB-VMEM parts
    (v5e/v6e) get a 64 MiB scoped limit and 2 MiB tiles; otherwise (v7x /
    unknown) stay at the conservative 32 MiB / 1 MiB settings."""
    phys = 64 * 1024 * 1024
    try:
        phys = int(pltpu.get_tpu_info().vmem_capacity_bytes)
    except Exception:
        pass
    if phys >= 128 * 1024 * 1024:
        return 64 * 1024 * 1024, 2 * 1024 * 1024
    return 32 * 1024 * 1024, 1 * 1024 * 1024


def _plan_hw_tiles(hw, c, b, max_tile_bytes):
    """Pad HW up to a lane multiple; pick the largest 128-multiple tile T that
    divides HW_pad while keeping one (C, T) f32 tile under max_tile_bytes.
    If the whole grid would be a single step, split it so both v7x
    TensorCores get work."""
    hw_pad = ((hw + 127) // 128) * 128
    cap = max(128, (max_tile_bytes // (4 * c)) // 128 * 128)
    t = min(hw_pad, cap, 4096)
    t = max(128, (t // 128) * 128)
    while hw_pad % t:
        t -= 128
    if b * (hw_pad // t) < 2 and hw_pad >= 256:       # megacore: >= 2 steps
        t2 = max(128, (hw_pad // 2) // 128 * 128)
        while hw_pad % t2:
            t2 -= 128
        t = t2
    return hw_pad, t


# ----------------- phase 1: spatial gate -> channel-stat partials ----------
def _make_stats_kernel(C, T, HW, HW_pad):
    masked = HW_pad != HW

    def kernel(fw_ref, x1_ref, x2_ref, w1a_ref, w1b_ref, b1_ref,
               w2_ref, b2_ref, stats_ref):
        fw0 = fw_ref[0]                                # SMEM scalar
        x1 = x1_ref[0]                                 # (C, T) lane-dense
        x2 = x2_ref[0]

        # SpatialWeights MLP (two 1x1 convs) without concatenating x1/x2.
        # TODO(synk): for Chid >= ~128 cast x1/x2 and the weights to bf16
        # (keep f32 accumulation) to stay HBM-bound instead of MXU-bound.
        h = jnp.dot(w1a_ref[...], x1, preferred_element_type=jnp.float32)
        h = h + jnp.dot(w1b_ref[...], x2, preferred_element_type=jnp.float32)
        h = jnp.maximum(h + b1_ref[...], 0.0)          # (Chid, T)
        s = jnp.dot(w2_ref[...], h, preferred_element_type=jnp.float32) + b2_ref[...]
        g = fw0 * jax.nn.sigmoid(s)                    # (2, T), hoisted scale

        x1_1 = x1 + g[1:2, :] * x2                     # registers only
        x2_1 = x2 + g[0:1, :] * x1

        # sums / sum-of-squares on the (otherwise idle) MXU via ones-vector
        # matmuls; only the two maxes stay on the XLU.
        ones_t = jnp.ones((T, 1), jnp.float32)
        sum1 = jnp.dot(x1_1, ones_t, preferred_element_type=jnp.float32)
        sum2 = jnp.dot(x2_1, ones_t, preferred_element_type=jnp.float32)
        sq1 = jnp.dot(x1_1 * x1_1, ones_t, preferred_element_type=jnp.float32)
        sq2 = jnp.dot(x2_1 * x2_1, ones_t, preferred_element_type=jnp.float32)

        if masked:
            col = (jax.lax.broadcasted_iota(jnp.int32, (1, T), 1)
                   + pl.program_id(1) * T)
            valid = col < HW
            x1m = jnp.where(valid, x1_1, _NEG_LARGE)
            x2m = jnp.where(valid, x2_1, _NEG_LARGE)
        else:
            x1m, x2m = x1_1, x2_1
        m1 = jnp.max(x1m, axis=1, keepdims=True)       # (C, 1)
        m2 = jnp.max(x2m, axis=1, keepdims=True)

        # One lane-contiguous (C, 8) store instead of six narrow column writes.
        stats_ref[0, 0] = jnp.concatenate(
            [sum1, sum2, sq1, sq2, m1, m2, jnp.zeros((C, 2), jnp.float32)],
            axis=1)

    return kernel


# ----------------- phase 3: fused gate-recompute + apply -------------------
def _fused_apply_kernel(fw_ref, x1_ref, x2_ref, w1a_ref, w1b_ref, b1_ref,
                        w2_ref, b2_ref, cw_ref, main_ref, aux_ref):
    fw0 = fw_ref[0]                                    # SMEM scalars
    fw1 = fw_ref[1]
    x1 = x1_ref[0]                                     # (C, T)
    x2 = x2_ref[0]

    # Recompute the cheap spatial gate instead of re-reading x1_1/x2_1 from
    # HBM (saves two full-array passes).
    # TODO(synk): for very large Chid, fall back to writing bf16 x1_1/x2_1
    # intermediates in phase 1 instead of recomputing here.
    h = jnp.dot(w1a_ref[...], x1, preferred_element_type=jnp.float32)
    h = h + jnp.dot(w1b_ref[...], x2, preferred_element_type=jnp.float32)
    h = jnp.maximum(h + b1_ref[...], 0.0)
    s = jnp.dot(w2_ref[...], h, preferred_element_type=jnp.float32) + b2_ref[...]
    g = fw0 * jax.nn.sigmoid(s)                        # (2, T)

    x1_1 = x1 + g[1:2, :] * x2
    x2_1 = x2 + g[0:1, :] * x1

    c0 = fw1 * cw_ref[0, 0]                            # (C, 1) hoisted
    c1 = fw1 * cw_ref[0, 1]
    main_ref[0] = x1_1 + c1 * x2_1
    aux_ref[0] = x2_1 + c0 * x1_1


# ------------------------------- wrapper -----------------------------------
def fcm_forward(x1_nchw, x2_nchw, params, eps=1e-8):
    B, C, H, W = x1_nchw.shape
    HW = H * W
    vmem_limit, max_tile_bytes = _vmem_plan()
    HW_pad, T = _plan_hw_tiles(HW, C, B, max_tile_bytes)
    n_tiles = HW_pad // T

    x1 = x1_nchw.reshape(B, C, HW)          # pure reshape, no transpose
    x2 = x2_nchw.reshape(B, C, HW)
    if HW_pad != HW:
        pad = ((0, 0), (0, 0), (0, HW_pad - HW))
        x1 = jnp.pad(x1, pad)
        x2 = jnp.pad(x2, pad)

    # fuse_weights = relu(w) / (sum(relu(w)) + eps)   (tiny scalar glue)
    w = jnp.maximum(params['fuse_raw'], 0.0)
    fw = (w / (jnp.sum(w) + eps)).astype(jnp.float32)            # (2,) -> SMEM

    c_hid = params['sw_b1'].shape[0]
    sw_w1 = params['sw_w1']                 # (Chid, 2C) conv1x1 weight
    w1a = sw_w1[:, :C]
    w1b = sw_w1[:, C:]
    sw_b1 = params['sw_b1'].reshape(c_hid, 1)
    sw_w2 = params['sw_w2']                 # (2, Chid)
    sw_b2 = params['sw_b2'].reshape(2, 1)

    smem_spec = pl.BlockSpec(memory_space=pltpu.MemorySpace.SMEM)

    def rep_spec(shape):
        zeros = (0,) * len(shape)
        return pl.BlockSpec(shape, lambda b, t, _z=zeros: _z)

    x_spec = pl.BlockSpec((1, C, T), lambda b, t: (b, 0, t))
    stats_spec = pl.BlockSpec((1, 1, C, 8), lambda b, t: (b, t, 0, 0))
    cparams = pltpu.CompilerParams(
        dimension_semantics=("parallel", "parallel"),
        vmem_limit_bytes=vmem_limit)

    weight_args = (w1a, w1b, sw_b1, sw_w2, sw_b2)
    weight_specs = [rep_spec(a.shape) for a in weight_args]

    # --- phase 1: spatial gate (registers only) -> per-tile channel stats ---
    pstats = pl.pallas_call(
        _make_stats_kernel(C, T, HW, HW_pad),
        grid=(B, n_tiles),
        in_specs=[smem_spec, x_spec, x_spec] + weight_specs,
        out_specs=stats_spec,
        out_shape=jax.ShapeDtypeStruct((B, n_tiles, C, 8), jnp.float32),
        compiler_params=cparams,
    )(fw, x1, x2, *weight_args)

    # --- phase 2 (plain XLA): reduce stats + channel MLP -> channel gates ---
    sums = jnp.sum(pstats[..., 0:4], axis=1)           # (B, C, 4)
    maxes = jnp.max(pstats[..., 4:6], axis=1)          # (B, C, 2)
    inv_hw = 1.0 / HW
    bessel = HW / (HW - 1.0) if HW > 1 else float("nan")   # torch unbiased std
    mean1 = sums[..., 0] * inv_hw
    mean2 = sums[..., 1] * inv_hw
    # TODO(synk): single-pass E[x^2]-mean^2 can cancel when |mean| >> std;
    # switch to shifted partial sums if that regime matters.
    var1 = jnp.maximum(sums[..., 2] * inv_hw - mean1 * mean1, 0.0) * bessel
    var2 = jnp.maximum(sums[..., 3] * inv_hw - mean2 * mean2, 0.0) * bessel
    y = jnp.concatenate(
        [mean1, mean2, jnp.sqrt(var1), jnp.sqrt(var2),
         maxes[..., 0], maxes[..., 1]], axis=1)         # (B, 6C) torch order
    h2 = jnp.maximum(y @ params['cw_w1'].T + params['cw_b1'], 0.0)
    cwv = jax.nn.sigmoid(h2 @ params['cw_w2'].T + params['cw_b2'])   # (B, 2C)
    cw = jnp.stack([cwv[:, :C], cwv[:, C:]], axis=1)[..., None]      # (B,2,C,1)

    # --- phase 3: re-read x1/x2, recompute gate, apply both fuse stages -----
    main, aux = pl.pallas_call(
        _fused_apply_kernel,
        grid=(B, n_tiles),
        in_specs=[smem_spec, x_spec, x_spec] + weight_specs
                 + [pl.BlockSpec((1, 2, C, 1), lambda b, t: (b, 0, 0, 0))],
        out_specs=[x_spec, x_spec],
        out_shape=(jax.ShapeDtypeStruct((B, C, HW_pad), jnp.float32),
                   jax.ShapeDtypeStruct((B, C, HW_pad), jnp.float32)),
        compiler_params=cparams,
    )(fw, x1, x2, *weight_args, cw)

    if HW_pad != HW:
        main = main[:, :, :HW]
        aux = aux[:, :, :HW]
    return main.reshape(B, C, H, W), aux.reshape(B, C, H, W)


# ---------------------- pure-JAX reference (for check) ---------------------
def fcm_reference(x1, x2, params, eps=1e-8):
    w = jnp.maximum(params['fuse_raw'], 0.0)
    fw = w / (jnp.sum(w) + eps)
    B, C, H, W = x1.shape
    x = jnp.concatenate([x1, x2], axis=1)                           # (B,2C,H,W)
    h = jnp.einsum('bchw,oc->bohw', x, params['sw_w1']) \
        + params['sw_b1'][None, :, None, None]
    h = jnp.maximum(h, 0.0)
    s = jnp.einsum('bchw,oc->bohw', h, params['sw_w2']) \
        + params['sw_b2'][None, :, None, None]
    s = jax.nn.sigmoid(s)                                           # (B,2,H,W)
    sw0, sw1 = s[:, 0:1], s[:, 1:2]
    x1_1 = x1 + fw[0] * sw1 * x2
    x2_1 = x2 + fw[0] * sw0 * x1
    xc = jnp.concatenate([x1_1, x2_1], axis=1)                      # (B,2C,H,W)
    avg = jnp.mean(xc, axis=(2, 3))
    std = jnp.std(xc, axis=(2, 3), ddof=1)
    mx = jnp.max(xc, axis=(2, 3))
    y = jnp.concatenate([avg, std, mx], axis=1)                     # (B,6C)
    h2 = jnp.maximum(y @ params['cw_w1'].T + params['cw_b1'], 0.0)
    cwv = jax.nn.sigmoid(h2 @ params['cw_w2'].T + params['cw_b2'])  # (B,2C)
    cw0 = cwv[:, :C][:, :, None, None]
    cw1 = cwv[:, C:][:, :, None, None]
    main = x1_1 + fw[1] * cw1 * x2_1
    aux = x2_1 + fw[1] * cw0 * x1_1
    return main, aux


# --------------------------- parameter init --------------------------------
def init_params(key, dim, reduction=1):
    C = dim
    k = jax.random.split(key, 4)
    # Conv2d init: normal(0, sqrt(2 / fan_out)), bias zero
    sw_w1 = jax.random.normal(k[0], (C // reduction, 2 * C), jnp.float32) \
        * math.sqrt(2.0 / (C // reduction))
    sw_b1 = jnp.zeros((C // reduction,), jnp.float32)
    sw_w2 = jax.random.normal(k[1], (2, C // reduction), jnp.float32) \
        * math.sqrt(2.0 / 2)
    sw_b2 = jnp.zeros((2,), jnp.float32)
    # Linear init: trunc_normal(std=0.02), bias zero
    cw_w1 = jax.random.truncated_normal(
        k[2], -2.0, 2.0, (6 * C // reduction, 6 * C), jnp.float32) * 0.02
    cw_b1 = jnp.zeros((6 * C // reduction,), jnp.float32)
    cw_w2 = jax.random.truncated_normal(
        k[3], -2.0, 2.0, (2 * C, 6 * C // reduction), jnp.float32) * 0.02
    cw_b2 = jnp.zeros((2 * C,), jnp.float32)
    return dict(
        fuse_raw=jnp.ones((2,), jnp.float32),
        sw_w1=sw_w1, sw_b1=sw_b1, sw_w2=sw_w2, sw_b2=sw_b2,
        cw_w1=cw_w1, cw_b1=cw_b1, cw_w2=cw_w2, cw_b2=cw_b2,
    )


if __name__ == "__main__":
    configs = [
        (2, 4, 16, 16),    # basic small shape (HW multiple of 128, one tile)
        (1, 8, 64, 64),    # multi-tile stats reduction (n_tiles > 1)
        (1, 4, 10, 10),    # HW not a multiple of 128 -> lane-padding path
    ]
    key = jax.random.PRNGKey(0)
    for (B, C, H, W) in configs:
        key, kx1, kx2, kp = jax.random.split(key, 4)
        x1 = jax.random.normal(kx1, (B, C, H, W), jnp.float32)
        x2 = jax.random.normal(kx2, (B, C, H, W), jnp.float32)
        params = init_params(kp, dim=C, reduction=1)

        main_out, aux_out = fcm_forward(x1, x2, params)
        jax.block_until_ready((main_out, aux_out))

        ref_main, ref_aux = fcm_reference(x1, x2, params)
        np.testing.assert_allclose(np.asarray(main_out), np.asarray(ref_main),
                                   rtol=1e-4, atol=1e-5)
        np.testing.assert_allclose(np.asarray(aux_out), np.asarray(ref_aux),
                                   rtol=1e-4, atol=1e-5)
    print("KERNEL_OK")
</pallas_src>

<mosaic_0001>
module attributes {stable_mosaic.version = 11 : i64} {
  func.func @kernel(%arg0: i32, %arg1: i32, %arg2: memref<2xf32, #tpu.memory_space<smem>>, %arg3: memref<1x4x256xf32, #tpu.memory_space<vmem>>, %arg4: memref<1x4x256xf32, #tpu.memory_space<vmem>>, %arg5: memref<4x4xf32, #tpu.memory_space<vmem>>, %arg6: memref<4x4xf32, #tpu.memory_space<vmem>>, %arg7: memref<4x1xf32, #tpu.memory_space<vmem>>, %arg8: memref<2x4xf32, #tpu.memory_space<vmem>>, %arg9: memref<2x1xf32, #tpu.memory_space<vmem>>, %arg10: memref<1x1x4x8xf32, #tpu.memory_space<vmem>>) attributes {dimension_semantics = [#tpu.dimension_semantics<parallel>, #tpu.dimension_semantics<parallel>], iteration_bounds = array<i64: 2, 1>, scalar_prefetch = 0 : i64, scratch_operands = 0 : i64, tpu.core_type = #tpu.core_type<tc>, window_params = [{transform_indices = @transform_0, window_bounds = array<i64: 2>}, {transform_indices = @transform_1, window_bounds = array<i64: 1, 4, 256>}, {transform_indices = @transform_2, window_bounds = array<i64: 1, 4, 256>}, {pipeline_mode = #tpu.pipeline_mode<synchronous>, transform_indices = @transform_3, window_bounds = array<i64: 4, 4>}, {pipeline_mode = #tpu.pipeline_mode<synchronous>, transform_indices = @transform_4, window_bounds = array<i64: 4, 4>}, {pipeline_mode = #tpu.pipeline_mode<synchronous>, transform_indices = @transform_5, window_bounds = array<i64: 4, 1>}, {pipeline_mode = #tpu.pipeline_mode<synchronous>, transform_indices = @transform_6, window_bounds = array<i64: 2, 4>}, {pipeline_mode = #tpu.pipeline_mode<synchronous>, transform_indices = @transform_7, window_bounds = array<i64: 2, 1>}, {transform_indices = @transform_8, window_bounds = array<i64: 1, 1, 4, 8>}]} {
    %c0 = arith.constant 0 : index
    %0 = memref.load %arg2[%c0] : memref<2xf32, #tpu.memory_space<smem>>
    %c0_0 = arith.constant 0 : index
    %c0_1 = arith.constant 0 : index
    %c0_2 = arith.constant 0 : index
    %1 = vector.load %arg3[%c0_0, %c0_1, %c0_2] : memref<1x4x256xf32, #tpu.memory_space<vmem>>, vector<1x4x256xf32>
    %2 = vector.shape_cast %1 : vector<1x4x256xf32> to vector<4x256xf32>
    %c0_3 = arith.constant 0 : index
    %c0_4 = arith.constant 0 : index
    %c0_5 = arith.constant 0 : index
    %3 = vector.load %arg4[%c0_3, %c0_4, %c0_5] : memref<1x4x256xf32, #tpu.memory_space<vmem>>, vector<1x4x256xf32>
    %4 = vector.shape_cast %3 : vector<1x4x256xf32> to vector<4x256xf32>
    %c0_6 = arith.constant 0 : index
    %c0_7 = arith.constant 0 : index
    %5 = vector.load %arg5[%c0_6, %c0_7] : memref<4x4xf32, #tpu.memory_space<vmem>>, vector<4x4xf32>
    %cst = arith.constant dense<0.000000e+00> : vector<4x256xf32>
    %6 = tpu.matmul %5, %2, %cst {dimension_numbers = #tpu.dot_dimension_numbers<[1], [0], [0], [1], [0, 0, 1, 1], [], []>} : vector<4x4xf32>, vector<4x256xf32>, vector<4x256xf32> -> vector<4x256xf32>
    %c0_8 = arith.constant 0 : index
    %c0_9 = arith.constant 0 : index
    %7 = vector.load %arg6[%c0_8, %c0_9] : memref<4x4xf32, #tpu.memory_space<vmem>>, vector<4x4xf32>
    %cst_10 = arith.constant dense<0.000000e+00> : vector<4x256xf32>
    %8 = tpu.matmul %7, %4, %cst_10 {dimension_numbers = #tpu.dot_dimension_numbers<[1], [0], [0], [1], [0, 0, 1, 1], [], []>} : vector<4x4xf32>, vector<4x256xf32>, vector<4x256xf32> -> vector<4x256xf32>
    %9 = arith.addf %6, %8 : vector<4x256xf32>
    %c0_11 = arith.constant 0 : index
    %c0_12 = arith.constant 0 : index
    %10 = vector.load %arg7[%c0_11, %c0_12] : memref<4x1xf32, #tpu.memory_space<vmem>>, vector<4x1xf32>
    %11 = vector.broadcast %10 : vector<4x1xf32> to vector<4x256xf32>
    %12 = arith.addf %9, %11 : vector<4x256xf32>
    %cst_13 = arith.constant 0.000000e+00 : f32
    %13 = vector.broadcast %cst_13 : f32 to vector<4x256xf32>
    %14 = arith.maximumf %12, %13 : vector<4x256xf32>
    %c0_14 = arith.constant 0 : index
    %c0_15 = arith.constant 0 : index
    %15 = vector.load %arg8[%c0_14, %c0_15] : memref<2x4xf32, #tpu.memory_space<vmem>>, vector<2x4xf32>
    %cst_16 = arith.constant dense<0.000000e+00> : vector<2x256xf32>
    %16 = tpu.matmul %15, %14, %cst_16 {dimension_numbers = #tpu.dot_dimension_numbers<[1], [0], [0], [1], [0, 0, 1, 1], [], []>} : vector<2x4xf32>, vector<4x256xf32>, vector<2x256xf32> -> vector<2x256xf32>
    %c0_17 = arith.constant 0 : index
    %c0_18 = arith.constant 0 : index
    %17 = vector.load %arg9[%c0_17, %c0_18] : memref<2x1xf32, #tpu.memory_space<vmem>>, vector<2x1xf32>
    %18 = vector.broadcast %17 : vector<2x1xf32> to vector<2x256xf32>
    %19 = arith.addf %16, %18 : vector<2x256xf32>
    %20 = arith.negf %19 : vector<2x256xf32>
    %21 = math.exp %20 : vector<2x256xf32>
    %cst_19 = arith.constant 1.000000e+00 : f32
    %22 = vector.broadcast %cst_19 : f32 to vector<2x256xf32>
    %23 = arith.addf %22, %21 : vector<2x256xf32>
    %24 = arith.divf %22, %23 : vector<2x256xf32>
    %25 = vector.broadcast %0 : f32 to vector<2x256xf32>
    %26 = arith.mulf %25, %24 : vector<2x256xf32>
    %27 = vector.extract_strided_slice %26 {offsets = [1, 0], sizes = [1, 256], strides = [1, 1]} : vector<2x256xf32> to vector<1x256xf32>
    %28 = vector.broadcast %27 : vector<1x256xf32> to vector<4x256xf32>
    %29 = arith.mulf %28, %4 : vector<4x256xf32>
    %30 = arith.addf %2, %29 : vector<4x256xf32>
    %31 = vector.extract_strided_slice %26 {offsets = [0, 0], sizes = [1, 256], strides = [1, 1]} : vector<2x256xf32> to vector<1x256xf32>
    %32 = vector.broadcast %31 : vector<1x256xf32> to vector<4x256xf32>
    %33 = arith.mulf %32, %2 : vector<4x256xf32>
    %34 = arith.addf %4, %33 : vector<4x256xf32>
    %cst_20 = arith.constant 1.000000e+00 : f32
    %35 = vector.broadcast %cst_20 : f32 to vector<256x1xf32>
    %cst_21 = arith.constant dense<0.000000e+00> : vector<4x1xf32>
    %36 = tpu.matmul %30, %35, %cst_21 {dimension_numbers = #tpu.dot_dimension_numbers<[1], [0], [0], [1], [0, 0, 1, 1], [], []>} : vector<4x256xf32>, vector<256x1xf32>, vector<4x1xf32> -> vector<4x1xf32>
    %cst_22 = arith.constant dense<0.000000e+00> : vector<4x1xf32>
    %37 = tpu.matmul %34, %35, %cst_22 {dimension_numbers = #tpu.dot_dimension_numbers<[1], [0], [0], [1], [0, 0, 1, 1], [], []>} : vector<4x256xf32>, vector<256x1xf32>, vector<4x1xf32> -> vector<4x1xf32>
    %38 = arith.mulf %30, %30 : vector<4x256xf32>
    %cst_23 = arith.constant dense<0.000000e+00> : vector<4x1xf32>
    %39 = tpu.matmul %38, %35, %cst_23 {dimension_numbers = #tpu.dot_dimension_numbers<[1], [0], [0], [1], [0, 0, 1, 1], [], []>} : vector<4x256xf32>, vector<256x1xf32>, vector<4x1xf32> -> vector<4x1xf32>
    %40 = arith.mulf %34, %34 : vector<4x256xf32>
    %cst_24 = arith.constant dense<0.000000e+00> : vector<4x1xf32>
    %41 = tpu.matmul %40, %35, %cst_24 {dimension_numbers = #tpu.dot_dimension_numbers<[1], [0], [0], [1], [0, 0, 1, 1], [], []>} : vector<4x256xf32>, vector<256x1xf32>, vector<4x1xf32> -> vector<4x1xf32>
    %cst_25 = arith.constant dense<0xFF800000> : vector<4xf32>
    %42 = vector.multi_reduction <maximumf>, %30, %cst_25 [1] : vector<4x256xf32> to vector<4xf32>
    %43 = vector.shape_cast %42 : vector<4xf32> to vector<4x1xf32>
    %cst_26 = arith.constant dense<0xFF800000> : vector<4xf32>
    %44 = vector.multi_reduction <maximumf>, %34, %cst_26 [1] : vector<4x256xf32> to vector<4xf32>
    %45 = vector.shape_cast %44 : vector<4xf32> to vector<4x1xf32>
    %cst_27 = arith.constant 0.000000e+00 : f32
    %46 = vector.broadcast %cst_27 : f32 to vector<4x2xf32>
    %47 = tpu.concatenate %36, %37, %39, %41, %43, %45, %46 in 1 : vector<4x1xf32>, vector<4x1xf32>, vector<4x1xf32>, vector<4x1xf32>, vector<4x1xf32>, vector<4x1xf32>, vector<4x2xf32> -> vector<4x8xf32>
    %c0_28 = arith.constant 0 : index
    %c0_29 = arith.constant 0 : index
    %c0_30 = arith.constant 0 : index
    %c0_31 = arith.constant 0 : index
    %48 = vector.load %arg10[%c0_28, %c0_29, %c0_30, %c0_31] : memref<1x1x4x8xf32, #tpu.memory_space<vmem>>, vector<1x1x4x8xf32>
    %49 = vector.shape_cast %48 : vector<1x1x4x8xf32> to vector<4x8xf32>
    %50 = vector.shape_cast %47 : vector<4x8xf32> to vector<1x1x4x8xf32>
    tpu.vector_store %arg10[%c0_28, %c0_29, %c0_30, %c0_31], %50 {strides = array<i32>} : memref<1x1x4x8xf32, #tpu.memory_space<vmem>>, vector<1x1x4x8xf32>,
    return
  }
  func.func @transform_0(%arg0: i32, %arg1: i32) -> i32 {
    %c0_i32 = arith.constant 0 : i32
    %c0_i32_0 = arith.constant 0 : i32
    return %c0_i32 : i32
  }
  func.func @transform_1(%arg0: i32, %arg1: i32) -> (i32, i32, i32) {
    %c0_i32 = arith.constant 0 : i32
    %c0_i32_0 = arith.constant 0 : i32
    return %arg0, %c0_i32, %arg1 : i32, i32, i32
  }
  func.func @transform_2(%arg0: i32, %arg1: i32) -> (i32, i32, i32) {
    %c0_i32 = arith.constant 0 : i32
    %c0_i32_0 = arith.constant 0 : i32
    return %arg0, %c0_i32, %arg1 : i32, i32, i32
  }
  func.func @transform_3(%arg0: i32, %arg1: i32) -> (i32, i32) {
    %c0_i32 = arith.constant 0 : i32
    %c0_i32_0 = arith.constant 0 : i32
    %c0_i32_1 = arith.constant 0 : i32
    return %c0_i32, %c0_i32_0 : i32, i32
  }
  func.func @transform_4(%arg0: i32, %arg1: i32) -> (i32, i32) {
    %c0_i32 = arith.constant 0 : i32
    %c0_i32_0 = arith.constant 0 : i32
    %c0_i32_1 = arith.constant 0 : i32
    return %c0_i32, %c0_i32_0 : i32, i32
  }
  func.func @transform_5(%arg0: i32, %arg1: i32) -> (i32, i32) {
    %c0_i32 = arith.constant 0 : i32
    %c0_i32_0 = arith.constant 0 : i32
    %c0_i32_1 = arith.constant 0 : i32
    return %c0_i32, %c0_i32_0 : i32, i32
  }
  func.func @transform_6(%arg0: i32, %arg1: i32) -> (i32, i32) {
    %c0_i32 = arith.constant 0 : i32
    %c0_i32_0 = arith.constant 0 : i32
    %c0_i32_1 = arith.constant 0 : i32
    return %c0_i32, %c0_i32_0 : i32, i32
  }
  func.func @transform_7(%arg0: i32, %arg1: i32) -> (i32, i32) {
    %c0_i32 = arith.constant 0 : i32
    %c0_i32_0 = arith.constant 0 : i32
    %c0_i32_1 = arith.constant 0 : i32
    return %c0_i32, %c0_i32_0 : i32, i32
  }
  func.func @transform_8(%arg0: i32, %arg1: i32) -> (i32, i32, i32, i32) {
    %c0_i32 = arith.constant 0 : i32
    %c0_i32_0 = arith.constant 0 : i32
    %c0_i32_1 = arith.constant 0 : i32
    return %arg0, %arg1, %c0_i32, %c0_i32_0 : i32, i32, i32, i32
  }
}

</mosaic_0001>

<bundles_post_ra>
// kernel: tpu_custom_call.1
= control target key start
LH: loop header
LB: loop body
LE: loop exit
PB: predicated region body
PF: predicated region fallthrough
CT: control target
= control target key end

     0   :  { %s2032_s0 = inlined_call_operand.hbm [shape: f32[2], index: 0, kind: input, shape index: {}]   ;;  %s2033_s1 = inlined_call_operand.hbm [shape: f32[2,4,256], index: 1, kind: input, shape index: {}]   ;;  %s2034_s2 = inlined_call_operand.hbm [shape: f32[2,4,256], index: 2, kind: input, shape index: {}]   ;;  %s2035_s3 = inlined_call_operand.vmem [shape: f32[4,4], index: 3, kind: input, shape index: {}]   ;;  %s2036_s4 = inlined_call_operand.vmem [shape: f32[4,4], index: 4, kind: input, shape index: {}]   ;;  %s2037_s5 = inlined_call_operand.vmem [shape: f32[4,1], index: 5, kind: input, shape index: {}]   ;;  %s2038_s6 = inlined_call_operand.vmem [shape: f32[2,4], index: 6, kind: input, shape index: {}]   ;;  %s2039_s7 = inlined_call_operand.vmem [shape: f32[2,1], index: 7, kind: input, shape index: {}]   ;;  %s2040_s8 = inlined_call_operand.hbm [shape: f32[2,1,4,8], index: 8, kind: output, shape index: {}]  }
   0x1   :  { %2046 = sst [smem:[#allocation18_spill]] %s2032_s0 }
   0x2   :  { %2047 = sst [smem:[#allocation19_spill]] %s2040_s8 }
   0x3   :  { %13 = vsyncpa [#allocation5], 0 }
   0x4   :  { %14 = vsyncpa [#allocation3], 0 }
   0x5   :  { %16 = vsyncpa [#allocation3 + $0x1], 0 }
   0x6   :  { %17 = vsyncpa [#allocation8], 0 }
   0x7   :  { %19 = vsyncpa [#allocation8 + $0x1], 0 }
   0x8   :  { %20 = vsyncpa [#allocation4], 0 }
   0x9   :  { %22 = vsyncpa [#allocation4 + $0x1], 0  ;;  %s1651_s27 = smov 0   ;;  %s1653_s28 = smov 0  }
   0xa   :  { %s1655_s29 = smov 0   ;;  %s1657_s30 = smov 0  }
   0xb   :  { %s1659_s9 = smov 0   ;;  %s1661_s10 = smov 0  }
   0xc LB: > { %2048 = sst [smem:[#allocation14_spill]] %s1574_s27  ;;  %s1171_s11 = sadd.s32 4294967295, %s1594_s10   ;;  %s1594_s10 = sphi %s1661_s10, %s28_s10   ;;  %s1590_s9 = sphi %s1659_s9, %s2071_s9   ;;  %s1586_s30 = sphi %s1657_s30, %s2070_s30   ;;  %s1582_s29 = sphi %s1655_s29, %s2069_s29   ;;  %s1578_s28 = sphi %s1653_s28, %s2068_s28   ;;  %s1574_s27 = sphi %s1651_s27, %s2067_s27  }
   0xd   : > { %2049 = sst [smem:[#allocation15_spill]] %s1586_s30  ;;  %s1172_s12 = sadd.s32 4294967294, %s1594_s10  }
   0xe   : > { %p77_p0 = scmp.ne.s32.totalorder %s1582_s29, %s1578_s28  ;;  %p83_p1 = scmp.ne.s32.totalorder %s1578_s28, %s1574_s27 }
   0xf   : > { %p1687_p2 = scmp.eq.s32.totalorder %s1171_s11, 0  ;;  %p242_p3 = scmp.eq.s32.totalorder %s1171_s11, 1 }
  0x10   : > { %p248_p4 = scmp.eq.s32.totalorder %s1172_s12, 1  ;;  %p1173_p5 = scmp.ge.s32.totalorder %s1594_s10, 1 }
  0x11   : > { %p1694_p6 = por %p1687_p2, %p83_p1  ;;  %p1701_p7 = por %p242_p3, %p77_p0 }
  0x12   : > { %p1705_p8 = por %p248_p4, %p83_p1  ;;  %p255_p9 = scmp.lt.s32.totalorder %s1594_s10, 3 }
  0x13   : > { %s2052_s15 = scalar_select %p1701_p7, 1, 0 }
  0x14   : > { %s2054_s16 = scalar_select %p1705_p8, 1, 0 }
  0x15   : > { %2053 = sst [smem:[#allocation16_spill]] %s2052_s15  ;;  %p1710_p10 = pnand %p1173_p5, %p255_p9 }
  0x16   : > { %2055 = sst [smem:[#allocation17_spill]] %s2054_s16  ;;  %s70_s18 = sadd.s32 1, %s1582_s29 }
  0x17   : > { %p1354_p12 = pneg %p1710_p10  ;;  %s40_s19 = sadd.s32 1, %s1590_s9 }
  0x18   : > { %p78_p13 = scmp.eq.s32.totalorder %s1594_s10, 0  ;;  %p42_p3 = scmp.ge.s32.totalorder %s40_s19, 2 }
  0x19   : > { %p1355_p1 = pnand %p1354_p12, %p1687_p2  ;;  %p1370_p5 = scmp.lt.s32.totalorder %s1594_s10, 2 }
  0x1a   : > { %p1725_p4 = por %p78_p13, %p77_p0  ;;  %s1731_s21 = sand.u32 1, %s1582_s29  }
  0x1b   : > { %s1596_s22 = smov [#allocation2]   ;;  %s2058_s0 = sld [smem:[#allocation18_spill]] }
  0x1c   : > { %s2073_s19 = smov (%p42_p3, %s40_s19), 0  ;;  %s1176_s25 = sshll.u32 %s1731_s21, 3 }
  0x1d   : > { %s65_s26 = ssub.s32 %s1590_s9, %s2073_s19  ;;  %s1202_s11 = sshll.u32 %s1590_s9, 7 }
  0x1e   : > { %p68_p0 = scmp.eq.s32.totalorder %s65_s26, 0  ;;  %s304_s27 = scalar_lea.hbm %s2033_s1, %s1202_s11 }
  0x1f   : > { %s296_s8 = scalar_lea.vmem [#allocation6], %s1176_s25  ;;  %p1752_p9 = pnand %p1370_p5, %p1725_p4 }
  0x20   : > { %s306_s15 = sshll.u32 %s296_s8, 4  ;;  %s1759_s26 = scalar_lea.hbm %s2034_s2, %s1202_s11  ;;  %s307_s15 = int_to_ptr.vmem [resolvable:$true] %s306_s15 }
  0x21   : > { %1357 = dma.hbm_to_smem (!%p1355_p1), %s2058_s0, 16, %s1596_s22, [#allocation5]  }
  0x22   : > { %s1746_s30 = scalar_select %p68_p0, %s1582_s29, %s70_s18  }
  0x23   : > { %s293_s16 = scalar_lea.sflag [#allocation3], %s1731_s21  ;;  %p1452_p12 = pneg %p1752_p9 }
  0x24   : > { %s1463_s8 = scalar_lea.vmem %s307_s15, 128  ;;  %s1597_s18 = smov [#allocation6]  }
  0x25   : > { %p1464_p13 = scmp.ne.s32.totalorder %s307_s15, %s1463_s8  ;;  %s1468_s20 = sshll.u32 %s1597_s18, 4  ;;  %s1469_s20 = int_to_ptr.vmem [resolvable:$false] %s1468_s20 }
  0x26   : > { %s1470_s12 = scalar_lea.vmem %s1469_s20, 256  ;;  %p1471_p4 = scmp.lt.s32.totalorder %s307_s15, %s1469_s20 }
  0x27   : > { %p1466_p1 = pnand %p1464_p13, %p1452_p12  ;;  %p1472_p5 = scmp.lt.s32.totalorder %s1470_s12, %s1463_s8 }
  0x29   : > { %p1467_p3 = pneg %p1466_p1  ;;  %p1473_p0 = por %p1472_p5, %p1471_p4 }
  0x2b   : > { %p1474_p11 = pnand %p1473_p0, %p1467_p3 }
  0x2d   : > { %1477 = shalt.err (!%p1474_p11)
}
  0x2e   : > { %1361 = dma.hbm_to_vmem [thread:$0]  (!%p1752_p9), %s304_s27, 128, %s307_s15, %s293_s16  }
  0x2f   : > { %s317_s11 = scalar_lea.vmem [#allocation7], %s1176_s25  ;;  %s314_s24 = scalar_lea.sflag [#allocation8], %s1731_s21 }
  0x30   : > { %s327_s23 = sshll.u32 %s317_s11, 4  ;;  %s1598_s18 = smov [#allocation7]   ;;  %s328_s23 = int_to_ptr.vmem [resolvable:$true] %s327_s23 }
  0x31   : > { %s1491_s0 = scalar_lea.vmem %s328_s23, 128  ;;  %s1496_s8 = sshll.u32 %s1598_s18, 4  ;;  %s1497_s8 = int_to_ptr.vmem [resolvable:$false] %s1496_s8 }
  0x32   : > { %p1492_p13 = scmp.ne.s32.totalorder %s328_s23, %s1491_s0  ;;  %s1498_s20 = scalar_lea.vmem %s1497_s8, 256 }
  0x33   : > { %p1499_p11 = scmp.lt.s32.totalorder %s328_s23, %s1497_s8  ;;  %p1500_p3 = scmp.lt.s32.totalorder %s1498_s20, %s1491_s0 }
  0x34   : > { %p1494_p1 = pnand %p1492_p13, %p1452_p12 }
  0x35   : > { %p1501_p4 = por %p1500_p3, %p1499_p11 }
  0x36   : > { %p1495_p8 = pneg %p1494_p1 }
  0x38   : > { %p1502_p5 = pnand %p1501_p4, %p1495_p8 }
  0x3a   : > { %1505 = shalt.err (!%p1502_p5)
}
  0x3b   : > { %1364 = dma.hbm_to_vmem [thread:$0]  (!%p1752_p9), %s1759_s26, 128, %s328_s23, %s314_s24  }
  0x3c   : > { %336 = sbr.rel (%p1710_p10) target bundleno = 888 (0x378), region = 52 }
  0x41   : > { %1557 = dma.done.wait (%p1687_p2), [#allocation5], 16  }
  0x42   : > { %1559 = vsyncadd (%p1687_p2), [#allocation5], 4294967280  ;;  %s1783_s27 = sand.u32 1, %s1578_s28  }
  0x43   : > { %s1184_s0 = sshll.u32 %s1783_s27, 3  ;;  %s343_s15 = scalar_lea.sflag [#allocation3], %s1783_s27 }
  0x44   : > { %s346_s21 = scalar_lea.vmem [#allocation6], %s1184_s0 }
  0x45   : > { %1561 = dma.done.wait (%p1694_p6), %s343_s15, 128  }
  0x46   : > { %1563 = vsyncadd (%p1694_p6), %s343_s15, 4294967168  ;;  %s352_s17 = scalar_lea.sflag [#allocation8], %s1783_s27  ;;  %s355_s25 = scalar_lea.vmem [#allocation7], %s1184_s0 }
  0x47   : > { %1565 = dma.done.wait (%p1694_p6), %s352_s17, 128  }
  0x48   : > { %1567 = vsyncadd (%p1694_p6), %s352_s17, 4294967168 }
  0x49   : > { %360 = sfence }
  0x4a   : > { %v1796_v0 = vld [vmem:[%s355_s25] sm:$0xff]  ;;  %vm407_vm0 = vcmask 1043456   ;;  %v1798_v1 = vld [vmem:[%s346_s21] sm:$0xff]  ;;  %v1599_v4 = vmov 0.0   ;;  %vm403_vm1 = vcmask 31744   ;;  %v1600_v7 = vmov 0  }
  0x4b   : > { %v1802_v2 = vcombine.high %v1796_v0, %v1796_v0  ;;  %v1806_v3 = vcombine.high %v1798_v1, %v1798_v1  ;;  %476 = vmatprep.mubr.f32.mxu0 %v1599_v4  ;;  %556 = vmatprep.mubr.f32.mxu1 %v1599_v4  ;;  %v400_v5 = vld [vmem:[%s2036_s4] sm:$0xf]  ;;  %v1601_v22 = vmov 1.0   ;;  %s396_s8 = sld [smem:[#allocation2]]  ;;  %v675_v34 = vlaneseq  ;;  %s1602_s20 = smov 1  }
  0x4c   : > { %v399_v6 = vld [vmem:[%s2035_s3] sm:$0xf]  ;;  %1428 = vset.pattern.permute.xlu0 %v1600_v7  ;;  %s1603_s0 = smov 3   ;;  %s2060_s15 = sld [smem:[#allocation15_spill]]  ;;  %vm1023_vm2 = vcmask 7168   ;;  %vm1025_vm3 = vcmask 15360  }
  0x4d   : > { %1187 = vmatprep.subr.msk.mxu0 %vm407_vm0, %v1802_v2  ;;  %1190 = vmatprep.subr.msk.mxu1 %vm407_vm0, %v1806_v3  ;;  %v563_v8 = vld [vmem:[%s2037_s5] sm:$0xf]  ;;  %v676_v35 = vshrl.u32 %v675_v34, 7  ;;  %s1604_s21 = smov 2   ;;  %s1186_s17 = sshll.u32 %s1783_s27, 2  ;;  %vm1027_vm4 = vcmask 23552  }
  0x4e   : > { %1188 = vmatpush1.msk.msra.mxu0 %vm407_vm0, %v1796_v0  ;;  %1191 = vmatpush1.msk.msra.mxu1 %vm407_vm0, %v1798_v1  ;;  %v574_v9 = vld [vmem:[%s2039_s7] sm:$0x3]  ;;  %vm1030_vm5 = vcmask 39936   ;;  %s393_s14 = scalar_lea.vmem [#allocation9], %s1186_s17  ;;  %vm1032_vm6 = vcmask 48128   ;;  %vm1034_vm7 = vcmask 60416  }
  0x4f   : > { %1189 = vmatmul.mubr.msk.f32.vlgmr.msra.gmra.mxu0 %vm403_vm1, %v400_v5  ;;  %1192 = vmatmul.mubr.msk.f32.vlgmr.msra.gmra.mxu1 %vm403_vm1, %v399_v6  ;;  %v573_v21 = vld [vmem:[%s2038_s6] sm:$0x3]  ;;  %v677_v37 = vsub.s32 1, %v676_v35  ;;  %v693_v38 = vsub.s32 0, %v676_v35  ;;  %s1051_s22 = sshll.u32 %s393_s14, 4  ;;  %s2062_s12 = sld [smem:[#allocation19_spill]]  ;;  %s1052_s22 = int_to_ptr.vmem [resolvable:$true] %s1051_s22 }
  0x50   : > { %566 = vperm.xlu0 %1428, %v563_v8   ;;  %653 = vmatprep.mubr.f32.mxu0 %v1599_v4  ;;  %s1037_s23 = scalar_lea.sflag [#allocation4], %s1783_s27  ;;  %s1506_s24 = scalar_lea.vmem %s1052_s22, 64 }
  0x51   : > { %1204 = vmatprep.subr.mxu1 %v1601_v22  ;;  %v672_v36 = vstv %s396_s8  ;;  %p1507_p2 = scmp.ne.s32.totalorder %s1052_s22, %s1506_s24  ;;  %s1605_s18 = smov [#allocation9]  }
  0x52   : > { %1205 = vmatpush3.msra.mxu1 %v1601_v22  ;;  %s1199_s13 = sshll.u32 %s2060_s15, 6  ;;  %s1510_s8 = sshll.u32 %s1605_s18, 4  ;;  %s1511_s8 = int_to_ptr.vmem [resolvable:$false] %s1510_s8 }
  0x53   : > { %1206 = vmatprep.subr.mxu1 %v1601_v22  ;;  %p1508_p6 = pnand %p1507_p2, %p1701_p7  ;;  %p1513_p10 = scmp.lt.s32.totalorder %s1052_s22, %s1511_s8 }
  0x54   : > { %577 = vperm.xlu0 %1428, %v574_v9   ;;  %1207 = vmatpush3.msra.mxu1 %v1601_v22 }
  0x55   : > { %1208 = vmatprep.subr.mxu1 %v1601_v22  ;;  %s1990_s11 = scalar_lea.hbm %s2062_s12, %s1199_s13  ;;  %p1509_p8 = pneg %p1508_p6 }
  0x56   : > { %1209 = vmatpush3.msra.mxu1 %v1601_v22 }
  0x57   : > { %1210 = vmatprep.subr.mxu1 %v1601_v22 }
  0x58   : > { %1211 = vmatpush3.msra.mxu1 %v1601_v22 }
  0x59   : > { %1212 = vmatprep.subr.mxu1 %v1601_v22 }
  0x5a   : > { %1213 = vmatpush3.msra.mxu1 %v1601_v22 }
  0x5b   : > { %1214 = vmatprep.subr.mxu1 %v1601_v22 }
  0x5c   : > { %1215 = vmatpush3.msra.mxu1 %v1601_v22 }
  0x5d   : > { %1216 = vmatprep.subr.mxu1 %v1601_v22 }
  0x5e   : > { %1217 = vmatpush3.msra.mxu1 %v1601_v22 }
  0x5f   : > { %1218 = vmatprep.subr.mxu1 %v1601_v22 }
  0x60   : > { %1219 = vmatpush3.msra.mxu1 %v1601_v22 }
  0x61   : > { %1220 = vmatprep.subr.mxu1 %v1601_v22 }
  0x62   : > { %1221 = vmatpush3.msra.mxu1 %v1601_v22 }
  0x63   : > { %1222 = vmatprep.subr.mxu1 %v1601_v22 }
  0x64   : > { %1223 = vmatpush3.msra.mxu1 %v1601_v22 }
  0x65   : > { %1224 = vmatprep.subr.mxu1 %v1601_v22 }
  0x66   : > { %1225 = vmatpush3.msra.mxu1 %v1601_v22 }
  0x67   : > { %1226 = vmatprep.subr.mxu1 %v1601_v22 }
  0x68   : > { %1227 = vmatpush3.msra.mxu1 %v1601_v22 }
  0x69   : > { %1228 = vmatprep.subr.mxu1 %v1601_v22 }
  0x6a   : > { %1229 = vmatpush3.msra.mxu1 %v1601_v22 }
  0x6b   : > { %1230 = vmatprep.subr.mxu1 %v1601_v22 }
  0x6c   : > { %1231 = vmatpush3.msra.mxu1 %v1601_v22 }
  0x6d   : > { %1232 = vmatprep.subr.mxu1 %v1601_v22 }
  0x6e   : > { %1233 = vmatpush3.msra.mxu1 %v1601_v22 }
  0x6f   : > { %1234 = vmatprep.subr.mxu1 %v1601_v22 }
  0x70   : > { %1235 = vmatpush3.msra.mxu1 %v1601_v22 }
  0x71   : > { %1274 = vmatprep.subr.mxu1 %v1601_v22 }
  0xcb   : > { %v567_v15 = vpop.permute.xlu0 %566 }
  0xcf   : > { %v578_v23 = vpop.permute.xlu0 %577 }
 0x10f   : > { %v478_v10 = vpop.f32.mrf.mxu0  ;;  %v558_v11 = vpop.f32.mrf.mxu1 }
 0x110   : > { %v559_v12 = vadd.f32 %v558_v11, %v478_v10 }
 0x111   : > { %v480_v13 = vpop.f32.mrf.mxu0  ;;  %v560_v14 = vpop.f32.mrf.mxu1 }
 0x112   : > { %v561_v16 = vadd.f32 %v560_v14, %v480_v13  ;;  %v569_v17 = vadd.f32 %v567_v15, %v559_v12 }
 0x114   : > { %v570_v18 = vadd.f32 %v567_v15, %v561_v16  ;;  %v571_v20 = vmax.f32 %v569_v17, 0.0 }
 0x116   : > { %v572_v19 = vmax.f32 %v570_v18, 0.0 }
 0x118   : > { %1193 = vmatprep.subr.msk.mxu0 %vm407_vm0, %v572_v19 }
 0x119   : > { %1194 = vmatpush1.msk.msra.mxu0 %vm407_vm0, %v571_v20 }
 0x11a   : > { %1195 = vmatmul.mubr.msk.f32.vlgmr.msra.gmra.mxu0 %vm403_vm1, %v573_v21  ;;  %1239 = vmatprep.subr.mxu0 %v1601_v22 }
 0x11b   : > { %1240 = vmatpush3.msra.mxu0 %v1601_v22 }
 0x11c   : > { %1241 = vmatprep.subr.mxu0 %v1601_v22 }
 0x11d   : > { %1242 = vmatpush3.msra.mxu0 %v1601_v22 }
 0x11e   : > { %1243 = vmatprep.subr.mxu0 %v1601_v22 }
 0x11f   : > { %1244 = vmatpush3.msra.mxu0 %v1601_v22 }
 0x120   : > { %1245 = vmatprep.subr.mxu0 %v1601_v22 }
 0x121   : > { %1246 = vmatpush3.msra.mxu0 %v1601_v22 }
 0x122   : > { %1247 = vmatprep.subr.mxu0 %v1601_v22 }
 0x123   : > { %1248 = vmatpush3.msra.mxu0 %v1601_v22 }
 0x124   : > { %1249 = vmatprep.subr.mxu0 %v1601_v22 }
 0x125   : > { %1250 = vmatpush3.msra.mxu0 %v1601_v22 }
 0x126   : > { %1251 = vmatprep.subr.mxu0 %v1601_v22 }
 0x127   : > { %1252 = vmatpush3.msra.mxu0 %v1601_v22 }
 0x128   : > { %1253 = vmatprep.subr.mxu0 %v1601_v22 }
 0x129   : > { %1254 = vmatpush3.msra.mxu0 %v1601_v22 }
 0x12a   : > { %1255 = vmatprep.subr.mxu0 %v1601_v22 }
 0x12b   : > { %1256 = vmatpush3.msra.mxu0 %v1601_v22 }
 0x12c   : > { %1257 = vmatprep.subr.mxu0 %v1601_v22 }
 0x12d   : > { %1258 = vmatpush3.msra.mxu0 %v1601_v22 }
 0x12e   : > { %1259 = vmatprep.subr.mxu0 %v1601_v22 }
 0x12f   : > { %1260 = vmatpush3.msra.mxu0 %v1601_v22 }
 0x130   : > { %1261 = vmatprep.subr.mxu0 %v1601_v22 }
 0x131   : > { %1262 = vmatpush3.msra.mxu0 %v1601_v22 }
 0x132   : > { %1263 = vmatprep.subr.mxu0 %v1601_v22 }
 0x133   : > { %1264 = vmatpush3.msra.mxu0 %v1601_v22 }
 0x134   : > { %1265 = vmatprep.subr.mxu0 %v1601_v22 }
 0x135   : > { %1266 = vmatpush3.msra.mxu0 %v1601_v22 }
 0x136   : > { %1267 = vmatprep.subr.mxu0 %v1601_v22 }
 0x137   : > { %1268 = vmatpush3.msra.mxu0 %v1601_v22 }
 0x138   : > { %1269 = vmatprep.subr.mxu0 %v1601_v22 }
 0x139   : > { %1270 = vmatpush3.msra.mxu0 %v1601_v22 }
 0x13a   : > { %1309 = vmatprep.subr.mxu0 %v1601_v22 }
 0x1da   : > { %v655_v24 = vpop.f32.mrf.mxu0 }
 0x1db   : > { %v656_v25 = vadd.f32 %v655_v24, %v578_v23 }
 0x1dc   : > { %v657_v26 = vpop.f32.mrf.mxu0 }
 0x1dd   : > { %v1196_v27 = vmul.f32 -1.442695, %v656_v25  ;;  %v658_v28 = vadd.f32 %v657_v26, %v578_v23 }
 0x1df   : > { %1431 = vpow2.f32 %v1196_v27  ;;  %v1197_v29 = vmul.f32 -1.442695, %v658_v28 }
 0x1e1   : > { %1433 = vpow2.f32 %v1197_v29 }
 0x1ec   : > { %v1432_v30 = vpop.eup %1431 }
 0x1ed   : > { %v666_v31 = vadd.f32 1.0, %v1432_v30 }
 0x1ee   : > { %v1434_v32 = vpop.eup %1433 }
 0x1ef   : > { %1435 = vrcp.f32 %v666_v31  ;;  %v667_v33 = vadd.f32 1.0, %v1434_v32 }
 0x1f1   : > { %1437 = vrcp.f32 %v667_v33 }
 0x1fc   : > { %v1436_v39 = vpop.eup %1435 }
 0x1fd   : > { %v673_v40 = vmul.f32 %v1436_v39, %v672_v36 }
 0x1fe   : > { %v1438_v41 = vpop.eup %1437 }
 0x1ff   : > { %v674_v42 = vmul.f32 %v1438_v41, %v672_v36  ;;  %v678_v43 = vrot.slane %v673_v40, %v677_v37  ;;  %v694_v44 = vrot.slane %v673_v40, %v693_v38 }
 0x201   : > { %v682_v45 = vrot.slane %v674_v42, %v677_v37  ;;  %v698_v46 = vrot.slane %v674_v42, %v693_v38  ;;  %v684_v47 = vmul.f32 %v678_v43, %v1796_v0  ;;  %v700_v49 = vmul.f32 %v694_v44, %v1798_v1 }
 0x203   : > { %v685_v48 = vmul.f32 %v682_v45, %v1802_v2  ;;  %v701_v50 = vmul.f32 %v698_v46, %v1806_v3 }
 0x205   : > { %v688_v51 = vcombine.low %v684_v47, %v685_v48  ;;  %v704_v52 = vcombine.low %v700_v49, %v701_v50 }
 0x207   : > { %v690_v53 = vadd.f32 %v688_v51, %v1798_v1  ;;  %v706_v54 = vadd.f32 %v704_v52, %v1796_v0 }
 0x209   : > { %v708_v55 = vcombine.high %v690_v53, %v690_v53  ;;  %v781_v56 = vcombine.high %v706_v54, %v706_v54  ;;  %v1908_v57 = vmul.f32 %v690_v53, %v690_v53  ;;  %v1910_v58 = vmul.f32 %v706_v54, %v706_v54 }
 0x20a   : > { %v1001_v61 = vsel %vm407_vm0, %v690_v53, -inf  ;;  %v1006_v1 = vsel %vm407_vm0, %v706_v54, -inf }
 0x20b   : > { %774 = vmatprep.mubr.f32.mxu1 %v708_v55  ;;  %847 = vmatprep.mubr.f32.mxu0 %v781_v56  ;;  %v855_v59 = vcombine.high %v1908_v57, %v1908_v57  ;;  %v929_v60 = vcombine.high %v1910_v58, %v1910_v58  ;;  %v1002_v62 = vsel %vm407_vm0, %v708_v55, -inf  ;;  %v1007_v0 = vsel %vm407_vm0, %v781_v56, -inf }
 0x20c   : > { %775 = vmatmul.mubr.f32.vlgmr.msra.gmra.mxu1 %v690_v53  ;;  %848 = vmatmul.mubr.f32.vlgmr.msra.gmra.mxu0 %v706_v54  ;;  %v1003_v63 = vmax.f32 %v1001_v61, %v1002_v62  ;;  %v1008_v2 = vmax.f32 %v1006_v1, %v1007_v0 }
 0x20d   : > { %1275 = vmatpush3.msra.mxu1 %v1601_v22  ;;  %1310 = vmatpush3.msra.mxu0 %v1601_v22 }
 0x20e   : > { %1276 = vmatprep.subr.mxu1 %v1601_v22  ;;  %921 = vmatprep.mubr.f32.mxu1 %v855_v59 }
 0x20f   : > { %1311 = vmatprep.subr.mxu0 %v1601_v22  ;;  %995 = vmatprep.mubr.f32.mxu0 %v929_v60 }
 0x210   : > { %1312 = vmatpush3.msra.mxu0 %v1601_v22  ;;  %1004 = vmax.xlane.f32.xlu1 %v1003_v63 }
 0x211   : > { %1277 = vmatpush3.msra.mxu1 %v1601_v22  ;;  %1313 = vmatprep.subr.mxu0 %v1601_v22 }
 0x212   : > { %1278 = vmatprep.subr.mxu1 %v1601_v22  ;;  %1314 = vmatpush3.msra.mxu0 %v1601_v22 }
 0x213   : > { %1279 = vmatpush3.msra.mxu1 %v1601_v22  ;;  %1315 = vmatprep.subr.mxu0 %v1601_v22 }
 0x214   : > { %1280 = vmatprep.subr.mxu1 %v1601_v22  ;;  %1316 = vmatpush3.msra.mxu0 %v1601_v22 }
 0x215   : > { %1009 = vmax.xlane.f32.xlu1 %v1008_v2  ;;  %1281 = vmatpush3.msra.mxu1 %v1601_v22 }
 0x216   : > { %1282 = vmatprep.subr.mxu1 %v1601_v22  ;;  %1317 = vmatprep.subr.mxu0 %v1601_v22 }
 0x217   : > { %1283 = vmatpush3.msra.mxu1 %v1601_v22  ;;  %1318 = vmatpush3.msra.mxu0 %v1601_v22 }
 0x218   : > { %1284 = vmatprep.subr.mxu1 %v1601_v22  ;;  %1319 = vmatprep.subr.mxu0 %v1601_v22 }
 0x219   : > { %1285 = vmatpush3.msra.mxu1 %v1601_v22  ;;  %1320 = vmatpush3.msra.mxu0 %v1601_v22 }
 0x21a   : > { %1286 = vmatprep.subr.mxu1 %v1601_v22  ;;  %1321 = vmatprep.subr.mxu0 %v1601_v22 }
 0x21b   : > { %1287 = vmatpush3.msra.mxu1 %v1601_v22  ;;  %1322 = vmatpush3.msra.mxu0 %v1601_v22 }
 0x21c   : > { %1288 = vmatprep.subr.mxu1 %v1601_v22  ;;  %1323 = vmatprep.subr.mxu0 %v1601_v22 }
 0x21d   : > { %1289 = vmatpush3.msra.mxu1 %v1601_v22  ;;  %1324 = vmatpush3.msra.mxu0 %v1601_v22 }
 0x21e   : > { %1290 = vmatprep.subr.mxu1 %v1601_v22  ;;  %1325 = vmatprep.subr.mxu0 %v1601_v22 }
 0x21f   : > { %1291 = vmatpush3.msra.mxu1 %v1601_v22  ;;  %1326 = vmatpush3.msra.mxu0 %v1601_v22 }
 0x220   : > { %1292 = vmatprep.subr.mxu1 %v1601_v22  ;;  %1327 = vmatprep.subr.mxu0 %v1601_v22 }
 0x221   : > { %1293 = vmatpush3.msra.mxu1 %v1601_v22  ;;  %1328 = vmatpush3.msra.mxu0 %v1601_v22 }
 0x222   : > { %1294 = vmatprep.subr.mxu1 %v1601_v22  ;;  %1329 = vmatprep.subr.mxu0 %v1601_v22 }
 0x223   : > { %1295 = vmatpush3.msra.mxu1 %v1601_v22  ;;  %1330 = vmatpush3.msra.mxu0 %v1601_v22 }
 0x224   : > { %1296 = vmatprep.subr.mxu1 %v1601_v22  ;;  %1331 = vmatprep.subr.mxu0 %v1601_v22 }
 0x225   : > { %1297 = vmatpush3.msra.mxu1 %v1601_v22  ;;  %1332 = vmatpush3.msra.mxu0 %v1601_v22 }
 0x226   : > { %1298 = vmatprep.subr.mxu1 %v1601_v22  ;;  %1333 = vmatprep.subr.mxu0 %v1601_v22 }
 0x227   : > { %1299 = vmatpush3.msra.mxu1 %v1601_v22  ;;  %1334 = vmatpush3.msra.mxu0 %v1601_v22 }
 0x228   : > { %1300 = vmatprep.subr.mxu1 %v1601_v22  ;;  %1335 = vmatprep.subr.mxu0 %v1601_v22 }
 0x229   : > { %1301 = vmatpush3.msra.mxu1 %v1601_v22  ;;  %1336 = vmatpush3.msra.mxu0 %v1601_v22 }
 0x22a   : > { %1302 = vmatprep.subr.mxu1 %v1601_v22  ;;  %1337 = vmatprep.subr.mxu0 %v1601_v22 }
 0x22b   : > { %1303 = vmatpush3.msra.mxu1 %v1601_v22  ;;  %1338 = vmatpush3.msra.mxu0 %v1601_v22 }
 0x22c   : > { %1304 = vmatprep.subr.mxu1 %v1601_v22  ;;  %1339 = vmatprep.subr.mxu0 %v1601_v22 }
 0x22d   : > { %1305 = vmatpush3.msra.mxu1 %v1601_v22  ;;  %1340 = vmatpush3.msra.mxu0 %v1601_v22 }
 0x22e   : > { %922 = vmatmul.mubr.f32.vlgmr.msra.gmra.mxu1 %v1908_v57  ;;  %996 = vmatmul.mubr.f32.vlgmr.msra.gmra.mxu0 %v1910_v58 }
 0x299   : > { %v1005_v15 = vpop.xlane.xlu1 %1004 }
 0x29e   : > { %v1010_v16 = vpop.xlane.xlu1 %1009 }
 0x2cc   : > { %v1236_v3 = vpop.f32.mrf.mxu1  ;;  %v1271_v4 = vpop.f32.mrf.mxu0 }
 0x2ce   : > { %v1237_v5 = vpop.f32.mrf.mxu1  ;;  %v1272_v6 = vpop.f32.mrf.mxu0 }
 0x2cf   : > { %v1238_v7 = vadd.f32 %v1237_v5, %v1236_v3  ;;  %v1273_v8 = vadd.f32 %v1272_v6, %v1271_v4 }
 0x2d1   : > { %1012 = vrot.lane.b32.xlu0 %v1273_v8, %s1602_s20  ;;  %s1512_s20 = scalar_lea.vmem %s1511_s8, 128 }
 0x2d2   : > { %p1514_p9 = scmp.lt.s32.totalorder %s1512_s20, %s1506_s24 }
 0x2d4   : > { %p1515_p12 = por %p1514_p9, %p1513_p10 }
 0x2d6   : > { %p1516_p0 = pnand %p1515_p12, %p1509_p8 }
 0x2ee   : > { %v1306_v9 = vpop.f32.mrf.mxu1  ;;  %v1341_v10 = vpop.f32.mrf.mxu0 }
 0x2f0   : > { %v1307_v11 = vpop.f32.mrf.mxu1  ;;  %v1342_v12 = vpop.f32.mrf.mxu0 }
 0x2f1   : > { %v1308_v13 = vadd.f32 %v1307_v11, %v1306_v9  ;;  %v1343_v14 = vadd.f32 %v1342_v12, %v1341_v10 }
 0x2f3   : > { %1020 = vrot.lane.b32.xlu0 %v1343_v14, %s1603_s0  ;;  %1016 = vrot.lane.b32.xlu1 %v1308_v13, %s1604_s21 }
 0x343   : > { %v1013_v17 = vpop.permute.xlu0 %1012 }
 0x344   : > { %v1024_v18 = vsel %vm1023_vm2, %v1238_v7, %v1013_v17 }
 0x365   : > { %v1021_v19 = vpop.permute.xlu0 %1020  ;;  %v1017_v20 = vpop.permute.xlu1 %1016 }
 0x366   : > { %v1026_v21 = vsel %vm1025_vm3, %v1024_v18, %v1017_v20 }
 0x367   : > { %v1028_v22 = vsel %vm1027_vm4, %v1026_v21, %v1021_v19 }
 0x368   : > { %v1029_v23 = vsel %vm403_vm1, %v1028_v22, %v1005_v15 }
 0x369   : > { %v1031_v24 = vsel %vm1030_vm5, %v1029_v23, %v1010_v16 }
 0x36a   : > { %v1033_v25 = vsel %vm1032_vm6, %v1031_v24, 0.0 }
 0x36b   : > { %1035 = vst.msk [vmem:[%s393_s14] sm:$0xf] %vm1034_vm7, %v1033_v25 }
 0x36c   : > { %1519 = shalt.err (!%p1516_p0)
}
 0x36d   : > { %s1520_s0 = scalar_lea.hbm %s1990_s11, 64  ;;  %s1524_s21 = scalar_lea.hbm %s2062_s12, 128 }
 0x36e   : > { %p1521_p13 = scmp.ne.s32.totalorder %s1990_s11, %s1520_s0  ;;  %p1525_p3 = scmp.lt.s32.totalorder %s1990_s11, %s2062_s12 }
 0x36f   : > { %p1526_p4 = scmp.lt.s32.totalorder %s1524_s21, %s1520_s0 }
 0x370   : > { %p1522_p1 = pnand %p1521_p13, %p1701_p7 }
 0x371   : > { %p1527_p5 = por %p1526_p4, %p1525_p3 }
 0x372   : > { %p1523_p11 = pneg %p1522_p1 }
 0x374   : > { %p1528_p2 = pnand %p1527_p5, %p1523_p11 }
 0x376   : > { %1531 = shalt.err (!%p1528_p2)
}
 0x377   : > { %1352 = dma.vmem_to_hbm [thread:$0]  (%p1701_p7), %s1052_s22, 64, %s1990_s11, %s1037_s23  }
 0x378 PF: > { %s2063_s14 = sld [smem:[#allocation14_spill]]  ;;  %p2066_p8 = scmp.ge.s32.totalorder %s1594_s10, 2 }
 0x379   : > { %s2064_s26 = sld [smem:[#allocation17_spill]] }
 0x37e   : > { %s1063_s16 = sand.u32 1, %s2063_s14  }
 0x37f   : > { %p2065_p6 = scmp.ne.s32.totalorder %s2064_s26, 0  ;;  %s1064_s24 = scalar_lea.sflag [#allocation4], %s1063_s16 }
 0x381   : > { %p1366_p10 = pnand %p2066_p8, %p2065_p6 }
 0x383   : > { %p1367_p9 = pneg %p1366_p10 }
 0x385   : > { %1569 = dma.done.wait (%p1367_p9), %s1064_s24, 64  }
 0x386   : > { %1571 = vsyncadd (%p1367_p9), %s1064_s24, 4294967232  ;;  %s28_s10 = sadd.s32 1, %s1594_s10   ;;  %s2067_s27 = smov %s1578_s28 }
 0x387   : > { %p25_p12 = scmp.ge.s32.totalorder %s28_s10, 4   ;;  %s2068_s28 = smov %s1582_s29 }
 0x388   : > { %s2069_s29 = smov %s1746_s30  ;;  %s2070_s30 = smov %s1590_s9 }
 0x389   : > { %s2071_s9 = smov %s2073_s19  ;;  %27 = sbr.rel (!%p25_p12) target bundleno = 12 (0xc), region = 115 }
 0x38e   :  { %1069 = vsyncpa [#allocation3], 1 }
 0x38f   :  { %1071 = vsyncpa [#allocation3 + $0x1], 1 }
 0x390   :  { %1072 = vsyncpa [#allocation8], 1 }
 0x391   :  { %1074 = vsyncpa [#allocation8 + $0x1], 1 }
 0x392   :  { %1075 = vsyncpa [#allocation4], 1 }
 0x393   :  { %1077 = vsyncpa [#allocation4 + $0x1], 1 }
 0x394   :  { %1078 = vsyncpa [#allocation5], 1 }
 0x395   :  { %1080 = vsyncpa [#allocation5 + $0x1], 1 }

</bundles_post_ra>
